<compile_context>
chip_gen: v5e
topology: v5e:2x2
jax: 0.10.0
libtpu: 0.0.40
codegen_flags: <defaults>
</compile_context>

<pallas_src>
import functools

import jax
import jax.numpy as jnp
from jax.experimental import pallas as pl
from jax.experimental.pallas import tpu as pltpu


def _round_up(x: int, m: int) -> int:
    return ((x + m - 1) // m) * m


def _cdiv(a: int, b: int) -> int:
    return -(-a // b)


def _pick_row_tile(batch: int, block_rows: int) -> int:
    """Row tile: multiple of 8, bounded batch padding, >=2 grid steps if B>8."""
    if batch <= 8:
        return 8
    n_steps = max(2, _cdiv(batch, max(block_rows, 8)))  # >=2 steps -> v7x 2 TCs
    return _round_up(_cdiv(batch, n_steps), 8)


def mlp_kernel(x_ref, w1_ref, b1_ref, w2_ref, b2_ref, o_ref):
    # x:  (tm, In)   f32   w1: (In, Hp)  bf16   b1: (1, Hp)  f32
    # w2: (Hp, Out)  bf16  b2: (1, Out)  f32    o:  (tm, Out) f32
    x = x_ref[...].astype(jnp.bfloat16)  # cast in-kernel; no padded HBM copy of x

    # fc1: bf16 operands -> MXU, f32 accumulate, bias add in f32.
    h = jnp.dot(x, w1_ref[...], preferred_element_type=jnp.float32) + b1_ref[...]
    # ReLU commutes with the bf16 downcast; keep the intermediate in bf16
    # (halves spill/vst traffic between the two matmuls, esp. on v5e).
    h = jnp.maximum(h.astype(jnp.bfloat16), 0.0)

    # fc2: bf16 operands -> MXU, f32 accumulate, bias add in f32.
    y = jnp.dot(h, w2_ref[...], preferred_element_type=jnp.float32) + b2_ref[...]
    o_ref[...] = y.astype(o_ref.dtype)


def prepare_params(w1, b1, w2, b2):
    """One-time parameter prep (do this at model init, NOT per call).

    w1: (H, In), b1: (H,), w2: (Out, H), b2: (Out,)  -- PyTorch nn.Linear layout.
    Returns pre-transposed, hidden-padded, bf16 weights and f32 row-biases.
    """
    hidden, in_size = w1.shape
    out_size = w2.shape[0]
    h_p = _round_up(hidden, 128)  # lane-dense hidden (VMEM-only cost, tiny)

    w1_p = jnp.zeros((in_size, h_p), jnp.bfloat16).at[:, :hidden].set(
        w1.T.astype(jnp.bfloat16))
    b1_p = jnp.zeros((1, h_p), jnp.float32).at[0, :hidden].set(
        b1.astype(jnp.float32))
    w2_p = jnp.zeros((h_p, out_size), jnp.bfloat16).at[:hidden, :].set(
        w2.T.astype(jnp.bfloat16))
    b2_p = b2.astype(jnp.float32).reshape(1, out_size)
    return w1_p, b1_p, w2_p, b2_p


@functools.partial(jax.jit, static_argnames=("block_rows",))
def simple_classifier_fwd(x, w1_p, b1_p, w2_p, b2_p, *, block_rows=256):
    """fc1 -> ReLU -> fc2 with pre-prepared params (see prepare_params)."""
    B, in_size = x.shape
    assert w1_p.shape[0] == in_size
    h_p = w1_p.shape[1]
    out_size = w2_p.shape[1]

    tm = _pick_row_tile(B, block_rows)
    b_p = _round_up(B, tm)
    grid = (b_p // tm,)

    # Pad batch rows only if needed (static decision; no-op for aligned B).
    x_in = x if b_p == B else jnp.zeros((b_p, in_size), x.dtype).at[:B].set(x)

    # Guard: resident weights (double-buffered by Pallas) + streamed tiles must
    # fit the default scoped-VMEM budget.
    # TODO(synk): if hidden_size ever scales to the multi-thousand range, give
    # the constant-index weight specs pipeline_mode=pl.Buffered(1) (single
    # buffer) and/or re-tile over hidden/out (matters on v7x's 64 MiB VMEM).
    resident_bytes = 2 * (w1_p.size * 2 + w2_p.size * 2
                          + b1_p.size * 4 + b2_p.size * 4)
    streamed_bytes = 2 * (tm * in_size * 4 + tm * out_size * 4) + tm * h_p * 4
    assert resident_bytes + streamed_bytes < 24 * 1024 * 1024, (
        "weights too large to stay VMEM-resident; re-tile over hidden/out")

    flops = 2 * b_p * (in_size * h_p + h_p * out_size)
    bytes_accessed = (b_p * in_size * 4            # x read (f32, unpadded lanes)
                      + w1_p.size * 2 + w2_p.size * 2
                      + b1_p.size * 4 + b2_p.size * 4
                      + b_p * out_size * 4)        # output writeback (logical width)

    out = pl.pallas_call(
        mlp_kernel,
        out_shape=jax.ShapeDtypeStruct((b_p, out_size), jnp.float32),
        grid_spec=pltpu.PrefetchScalarGridSpec(
            num_scalar_prefetch=0,
            grid=grid,
            in_specs=[
                # x tiles stream over the batch grid (f32, logical feature width).
                pl.BlockSpec((tm, in_size), lambda i: (i, 0)),
                # Weights / biases: constant index_map -> resident in VMEM.
                pl.BlockSpec((in_size, h_p), lambda i: (0, 0)),
                pl.BlockSpec((1, h_p), lambda i: (0, 0)),
                pl.BlockSpec((h_p, out_size), lambda i: (0, 0)),
                pl.BlockSpec((1, out_size), lambda i: (0, 0)),
            ],
            # Output at logical width: masked vst, but ~8x less HBM writeback
            # than a 128-lane f32 pad, and no post-call column slice.
            out_specs=pl.BlockSpec((tm, out_size), lambda i: (i, 0)),
        ),
        compiler_params=pltpu.CompilerParams(
            dimension_semantics=("parallel",),  # batch axis: shards across TCs on v7x
        ),
        cost_estimate=pl.CostEstimate(
            flops=flops, transcendentals=0, bytes_accessed=bytes_accessed),
    )(x_in, w1_p, b1_p, w2_p, b2_p)

    return out if b_p == B else out[:B]


if __name__ == "__main__":
    # Small shapes consistent with the module: input_size=32, hidden=64, output=16.
    # B=16 gives a 2-step batch grid (exercises pipelining / megacore path).
    B, IN, H, OUT = 16, 32, 64, 16

    key = jax.random.PRNGKey(0)
    kx, kw1, kb1, kw2, kb2 = jax.random.split(key, 5)

    x = jax.random.normal(kx, (B, IN), dtype=jnp.float32)
    # Deterministic parameter init (PyTorch nn.Linear-style uniform bounds).
    w1 = jax.random.uniform(kw1, (H, IN), jnp.float32, -1.0 / IN**0.5, 1.0 / IN**0.5)
    b1 = jax.random.uniform(kb1, (H,), jnp.float32, -1.0 / IN**0.5, 1.0 / IN**0.5)
    w2 = jax.random.uniform(kw2, (OUT, H), jnp.float32, -1.0 / H**0.5, 1.0 / H**0.5)
    b2 = jax.random.uniform(kb2, (OUT,), jnp.float32, -1.0 / H**0.5, 1.0 / H**0.5)

    # One-time weight prep (outside the per-call hot path).
    params = jax.block_until_ready(prepare_params(w1, b1, w2, b2))

    out = simple_classifier_fwd(x, *params)
    out = jax.block_until_ready(out)

    # Reference checks in plain JAX.
    #  (a) same bf16-operand / f32-accumulate math as the kernel -> tight tolerance
    h_ref = jnp.dot(x.astype(jnp.bfloat16), w1.T.astype(jnp.bfloat16),
                    preferred_element_type=jnp.float32) + b1
    h_ref = jnp.maximum(h_ref.astype(jnp.bfloat16), 0.0)
    ref_bf16 = jnp.dot(h_ref, w2.T.astype(jnp.bfloat16),
                       preferred_element_type=jnp.float32) + b2
    #  (b) full-f32 module semantics -> loose tolerance (bf16 operand rounding)
    ref_f32 = jnp.maximum(x @ w1.T + b1, 0.0) @ w2.T + b2

    assert out.shape == (B, OUT)
    assert out.dtype == jnp.float32
    assert jnp.allclose(out, ref_bf16, atol=1e-3, rtol=1e-3)
    assert jnp.allclose(out, ref_f32, atol=3e-2, rtol=3e-2)

    print("KERNEL_OK")
</pallas_src>

<mosaic_0001>
module attributes {stable_mosaic.version = 11 : i64} {
  func.func @mlp_kernel(%arg0: i32, %arg1: memref<8x32xf32, #tpu.memory_space<vmem>>, %arg2: memref<32x128xbf16, #tpu.memory_space<vmem>>, %arg3: memref<1x128xf32, #tpu.memory_space<vmem>>, %arg4: memref<128x16xbf16, #tpu.memory_space<vmem>>, %arg5: memref<1x16xf32, #tpu.memory_space<vmem>>, %arg6: memref<8x16xf32, #tpu.memory_space<vmem>>) attributes {dimension_semantics = [#tpu.dimension_semantics<parallel>], iteration_bounds = array<i64: 2>, scalar_prefetch = 0 : i64, scratch_operands = 0 : i64, tpu.core_type = #tpu.core_type<tc>, window_params = [{transform_indices = @transform_0, window_bounds = array<i64: 8, 32>}, {pipeline_mode = #tpu.pipeline_mode<synchronous>, transform_indices = @transform_1, window_bounds = array<i64: 32, 128>}, {pipeline_mode = #tpu.pipeline_mode<synchronous>, transform_indices = @transform_2, window_bounds = array<i64: 1, 128>}, {pipeline_mode = #tpu.pipeline_mode<synchronous>, transform_indices = @transform_3, window_bounds = array<i64: 128, 16>}, {pipeline_mode = #tpu.pipeline_mode<synchronous>, transform_indices = @transform_4, window_bounds = array<i64: 1, 16>}, {transform_indices = @transform_5, window_bounds = array<i64: 8, 16>}]} {
    %c0 = arith.constant 0 : index
    %c0_0 = arith.constant 0 : index
    %0 = vector.load %arg1[%c0, %c0_0] : memref<8x32xf32, #tpu.memory_space<vmem>>, vector<8x32xf32>
    %1 = arith.truncf %0 : vector<8x32xf32> to vector<8x32xbf16>
    %c0_1 = arith.constant 0 : index
    %c0_2 = arith.constant 0 : index
    %2 = vector.load %arg2[%c0_1, %c0_2] : memref<32x128xbf16, #tpu.memory_space<vmem>>, vector<32x128xbf16>
    %cst = arith.constant dense<0.000000e+00> : vector<8x128xf32>
    %3 = tpu.matmul %1, %2, %cst {dimension_numbers = #tpu.dot_dimension_numbers<[1], [0], [0], [1], [0, 0, 1, 1], [], []>} : vector<8x32xbf16>, vector<32x128xbf16>, vector<8x128xf32> -> vector<8x128xf32>
    %c0_3 = arith.constant 0 : index
    %c0_4 = arith.constant 0 : index
    %4 = vector.load %arg3[%c0_3, %c0_4] : memref<1x128xf32, #tpu.memory_space<vmem>>, vector<1x128xf32>
    %5 = vector.broadcast %4 : vector<1x128xf32> to vector<8x128xf32>
    %6 = arith.addf %3, %5 : vector<8x128xf32>
    %7 = arith.truncf %6 : vector<8x128xf32> to vector<8x128xbf16>
    %cst_5 = arith.constant 0.000000e+00 : bf16
    %8 = vector.broadcast %cst_5 : bf16 to vector<8x128xbf16>
    %9 = arith.maximumf %7, %8 : vector<8x128xbf16>
    %c0_6 = arith.constant 0 : index
    %c0_7 = arith.constant 0 : index
    %10 = vector.load %arg4[%c0_6, %c0_7] : memref<128x16xbf16, #tpu.memory_space<vmem>>, vector<128x16xbf16>
    %cst_8 = arith.constant dense<0.000000e+00> : vector<8x16xf32>
    %11 = tpu.matmul %9, %10, %cst_8 {dimension_numbers = #tpu.dot_dimension_numbers<[1], [0], [0], [1], [0, 0, 1, 1], [], []>} : vector<8x128xbf16>, vector<128x16xbf16>, vector<8x16xf32> -> vector<8x16xf32>
    %c0_9 = arith.constant 0 : index
    %c0_10 = arith.constant 0 : index
    %12 = vector.load %arg5[%c0_9, %c0_10] : memref<1x16xf32, #tpu.memory_space<vmem>>, vector<1x16xf32>
    %13 = vector.broadcast %12 : vector<1x16xf32> to vector<8x16xf32>
    %14 = arith.addf %11, %13 : vector<8x16xf32>
    %c0_11 = arith.constant 0 : index
    %c0_12 = arith.constant 0 : index
    %15 = vector.load %arg6[%c0_11, %c0_12] : memref<8x16xf32, #tpu.memory_space<vmem>>, vector<8x16xf32>
    tpu.vector_store %arg6[%c0_11, %c0_12], %14 {strides = array<i32>} : memref<8x16xf32, #tpu.memory_space<vmem>>, vector<8x16xf32>,
    return
  }
  func.func @transform_0(%arg0: i32) -> (i32, i32) {
    %c0_i32 = arith.constant 0 : i32
    %c0_i32_0 = arith.constant 0 : i32
    return %arg0, %c0_i32 : i32, i32
  }
  func.func @transform_1(%arg0: i32) -> (i32, i32) {
    %c0_i32 = arith.constant 0 : i32
    %c0_i32_0 = arith.constant 0 : i32
    %c0_i32_1 = arith.constant 0 : i32
    return %c0_i32, %c0_i32_0 : i32, i32
  }
  func.func @transform_2(%arg0: i32) -> (i32, i32) {
    %c0_i32 = arith.constant 0 : i32
    %c0_i32_0 = arith.constant 0 : i32
    %c0_i32_1 = arith.constant 0 : i32
    return %c0_i32, %c0_i32_0 : i32, i32
  }
  func.func @transform_3(%arg0: i32) -> (i32, i32) {
    %c0_i32 = arith.constant 0 : i32
    %c0_i32_0 = arith.constant 0 : i32
    %c0_i32_1 = arith.constant 0 : i32
    return %c0_i32, %c0_i32_0 : i32, i32
  }
  func.func @transform_4(%arg0: i32) -> (i32, i32) {
    %c0_i32 = arith.constant 0 : i32
    %c0_i32_0 = arith.constant 0 : i32
    %c0_i32_1 = arith.constant 0 : i32
    return %c0_i32, %c0_i32_0 : i32, i32
  }
  func.func @transform_5(%arg0: i32) -> (i32, i32) {
    %c0_i32 = arith.constant 0 : i32
    %c0_i32_0 = arith.constant 0 : i32
    return %arg0, %c0_i32 : i32, i32
  }
}

</mosaic_0001>

<bundles_post_ra>
// kernel: simple_classifier_fwd.1
= control target key start
LH: loop header
LB: loop body
LE: loop exit
PB: predicated region body
PF: predicated region fallthrough
CT: control target
= control target key end

     0   :  { %10 = vsyncpa [#allocation3], 0  ;;  %s739_s0 = inlined_call_operand.vmem [shape: f32[16,32], index: 0, kind: input, shape index: {}]   ;;  %s740_s1 = inlined_call_operand.vmem [shape: bf16[32,128], index: 1, kind: input, shape index: {}]   ;;  %s741_s2 = inlined_call_operand.vmem [shape: f32[1,128], index: 2, kind: input, shape index: {}]   ;;  %s742_s3 = inlined_call_operand.vmem [shape: bf16[128,16], index: 3, kind: input, shape index: {}]   ;;  %s743_s4 = inlined_call_operand.vmem [shape: f32[1,16], index: 4, kind: input, shape index: {}]   ;;  %s744_s5 = inlined_call_operand.hbm [shape: f32[16,16], index: 5, kind: output, shape index: {}]  }
   0x1   :  { %12 = vsyncpa [#allocation3 + $0x1], 0  ;;  %s618_s18 = smov 0   ;;  %s620_s19 = smov 0  }
   0x2   :  { %s622_s20 = smov 0   ;;  %s624_s21 = smov 0  }
   0x3 LB: > { %s639_s22 = sadd.s32 4294967295, %s586_s21   ;;  %s422_s23 = sadd.s32 4294967294, %s586_s21   ;;  %s586_s21 = sphi %s624_s21, %s750_s21   ;;  %s582_s20 = sphi %s622_s20, %s749_s20   ;;  %s578_s19 = sphi %s620_s19, %s748_s19   ;;  %s574_s18 = sphi %s618_s18, %s747_s18  }
   0x4   : > { %s643_s24 = sadd.s32 1, %s586_s21   ;;  %s135_s25 = sadd.s32 1, %s582_s20 }
   0x5   : > { %s132_s26 = ssub.s32 %s586_s21, %s643_s24  ;;  %p145_p0 = scmp.ne.s32.totalorder %s582_s20, %s578_s19 }
   0x6   : > { %p133_p1 = scmp.eq.s32.totalorder %s132_s26, 0  ;;  %p146_p2 = scmp.eq.s32.totalorder %s639_s22, 1 }
   0x7   : > { %p151_p3 = scmp.ne.s32.totalorder %s578_s19, %s574_s18  ;;  %p152_p4 = scmp.eq.s32.totalorder %s422_s23, 1 }
   0x8   : > { %s654_s27 = scalar_select %p133_p1, %s582_s20, %s135_s25  }
   0x9   : > { %p656_p5 = por %p146_p2, %p145_p0  ;;  %p660_p6 = por %p152_p4, %p151_p3 }
   0xa   : > { %p425_p7 = scmp.ge.s32.totalorder %s586_s21, 1  ;;  %p189_p8 = scmp.lt.s32.totalorder %s586_s21, 3 }
   0xc   : > { %p190_p9 = pnand %p425_p7, %p189_p8 }
   0xd   : > { %p216_p10 = scmp.lt.s32.totalorder (!%p190_p9), %s639_s22, 1  ;;  %s213_s16 = sand.u32 (!%p190_p9), 1, %s578_s19  }
   0xe   : > { %193 = sbr.rel (%p190_p9) target bundleno = 293 (0x125), region = 40  ;;  %s426_s23 = sshll.u32 (!%p190_p9), %s213_s16, 3 }
   0xf   : > { %s215_s8 = scalar_lea.vmem (!%p190_p9), [#allocation2], %s426_s23  ;;  %s544_s15 = scalar_lea.hbm (!%p190_p9), %s744_s5, 16 }
  0x10   : > { %s360_s9 = sshll.u32 (!%p190_p9), %s215_s8, 4  ;;  %s361_s9 = int_to_ptr.vmem [resolvable:$true] %s360_s9 }
  0x13   : > { %v474_v0 = vld [vmem:[%s740_s1 + $0x8] sm:$0xff]  ;;  %v482_v1 = vld [vmem:[%s742_s3 + $0x38] sm:$0xff]  ;;  %v473_v2 = vld [vmem:[%s740_s1] sm:$0xff]  ;;  %s217_s11 = scalar_select %p216_p10, %s639_s22, 1  ;;  %vm243_vm0 = vcmask 261120   ;;  %vm345_vm1 = vcmask 130048  }
  0x14   : > { %253 = vmatpush.bf16.msra.mxu0 %v474_v0  ;;  %332 = vmatpush.bf16.msra.mxu1 %v482_v1  ;;  %v481_v3 = vld [vmem:[%s742_s3 + $0x30] sm:$0xff]  ;;  %v480_v5 = vld [vmem:[%s742_s3 + $0x28] sm:$0xff]  ;;  %v479_v7 = vld [vmem:[%s742_s3 + $0x20] sm:$0xff] }
  0x15   : > { %s427_s14 = sshll.u32 %s217_s11, 3  ;;  %v478_v8 = vld [vmem:[%s742_s3 + $0x18] sm:$0xff]  ;;  %v477_v9 = vld [vmem:[%s742_s3 + $0x10] sm:$0xff]  ;;  %v476_v10 = vld [vmem:[%s742_s3 + $0x8] sm:$0xff] }
  0x16   : > { %s219_s17 = scalar_lea.vmem %s739_s0, %s427_s14  ;;  %v475_v11 = vld [vmem:[%s742_s3] sm:$0xff] }
  0x17   : > { %v221_v4 = vld [vmem:[%s219_s17] sm:$0xff]  ;;  %s470_s17 = sshll.u32 %s639_s22, 3  ;;  %s348_s22 = scalar_lea.sflag [#allocation3], %s213_s16 }
  0x18   : > { %254 = vmatpush.bf16.msra.mxu0 %v473_v2  ;;  %333 = vmatpush.bf16.msra.mxu1 %v481_v3  ;;  %v222_v6 = vpack.c.bf16 %v221_v4, %v221_v4  ;;  %v522_v12 = vld [vmem:[%s741_s2] ss:$0 sm:$0xff]  ;;  %s358_s30 = scalar_lea.hbm %s744_s5, %s470_s17 }
  0x19   : > { %v523_v18 = vld [vmem:[%s743_s4] ss:$0 sm:$0xff]  ;;  %s362_s10 = sshll.u32 %s358_s30, 4  ;;  %s363_s10 = int_to_ptr.hbm [resolvable:$true] %s362_s10 }
  0x1a   : > { %s538_s11 = sshra.s32 %s363_s10, 4  ;;  %s539_s11 = int_to_ptr.hbm [resolvable:$true] %s538_s11 }
  0x1b   : > { %436 = vmatmul.msk.bf16.vlgmr.msra.gmra.mxu0 %vm243_vm0, %v222_v6  ;;  %s540_s12 = scalar_lea.hbm %s539_s11, 8  ;;  %p545_p0 = scmp.lt.s32.totalorder %s539_s11, %s744_s5 }
  0x1c   : > { %334 = vmatpush.bf16.msra.mxu1 %v480_v5  ;;  %p541_p11 = scmp.ne.s32.totalorder %s539_s11, %s540_s12  ;;  %p546_p1 = scmp.lt.s32.totalorder %s544_s15, %s540_s12 }
  0x1e   : > { %p542_p12 = pnand %p541_p11, %p656_p5  ;;  %p547_p2 = por %p546_p1, %p545_p0 }
  0x20   : > { %335 = vmatpush.bf16.msra.mxu1 %v479_v7  ;;  %p543_p13 = pneg %p542_p12 }
  0x22   : > { %p548_p3 = pnand %p547_p2, %p543_p13 }
  0x24   : > { %336 = vmatpush.bf16.msra.mxu1 %v478_v8 }
  0x28   : > { %337 = vmatpush.bf16.msra.mxu1 %v477_v9 }
  0x2c   : > { %338 = vmatpush.bf16.msra.mxu1 %v476_v10 }
  0x30   : > { %339 = vmatpush.bf16.msra.mxu1 %v475_v11 }
  0x98   : > { %v256_v13 = vpop.f32.mrf.mxu0 }
  0x99   : > { %v257_v14 = vadd.f32 %v522_v12, %v256_v13 }
  0x9b   : > { %v262_v15 = vmax.f32 %v257_v14, 0.0 }
  0x9d   : > { %v263_v16 = vpack.c.bf16 %v262_v15, %v262_v15 }
  0x9f   : > { %340 = vmatmul.bf16.vlgmr.msra.gmra.mxu1 %v263_v16 }
  0xa0   : > { %v258_v17 = vpop.f32.mrf.mxu0 }
 0x11c   : > { %v341_v19 = vpop.f32.mrf.mxu1 }
 0x11d   : > { %v342_v20 = vadd.f32 %v523_v18, %v341_v19 }
 0x11f   : > { %346 = vst.msk [vmem:[%s215_s8] sm:$0xff] %vm345_vm1, %v342_v20 }
 0x120   : > { %551 = shalt.err (!%p548_p3)
}
 0x121   : > { %483 = dma.vmem_to_hbm [thread:$0]  (%p656_p5), %s361_s9, 128, %s363_s10, %s348_s22  }
 0x124   : > { %v343_v21 = vpop.f32.mrf.mxu1 }
 0x125 PF: > { %p489_p4 = scmp.ge.s32.totalorder %s586_s21, 2  ;;  %s374_s16 = sand.u32 1, %s574_s18  }
 0x126   : > { %s375_s25 = scalar_lea.sflag [#allocation3], %s374_s16 }
 0x127   : > { %p486_p7 = pnand %p489_p4, %p660_p6 }
 0x129   : > { %p487_p8 = pneg %p486_p7 }
 0x12b   : > { %569 = dma.done.wait (%p487_p8), %s375_s25, 128  }
 0x12c   : > { %571 = vsyncadd (%p487_p8), %s375_s25, 4294967168  ;;  %p15_p9 = scmp.ge.s32.totalorder %s643_s24, 4   ;;  %s747_s18 = smov %s578_s19 }
 0x12d   : > { %s748_s19 = smov %s582_s20  ;;  %s749_s20 = smov %s654_s27 }
 0x12e   : > { %s750_s21 = smov %s643_s24  ;;  %17 = sbr.rel (!%p15_p9) target bundleno = 3 (0x3), region = 75 }
 0x133   :  { %381 = vsyncpa [#allocation3], 1 }
 0x134   :  { %383 = vsyncpa [#allocation3 + $0x1], 1 }

</bundles_post_ra>
